<compile_context>
chip_gen: v7x
topology: tpu7x:2x2x1
jax: 0.10.0
libtpu: 0.0.40
codegen_flags: <defaults>
</compile_context>

<pallas_src>
import functools

import numpy as np
import jax
import jax.numpy as jnp
from jax import lax
from jax.experimental import pallas as pl
from jax.experimental.pallas import tpu as pltpu


# ----------------------------------------------------------------------------
# buildupfc (pure numpy, host side — identical to the PyTorch helper)
# ----------------------------------------------------------------------------
def buildupfc(n_iter, Btype='expo', n_stop=25000, n_up=5000, start=-5.0, stop=0.0):
    if Btype == 'expo':
        Llow = np.ones(n_up) * 10 ** start
        Lhigh = np.ones(n_iter - n_stop) * 10 ** stop
        Lramp = np.ones(n_stop - n_up) * 10 ** np.linspace(start, stop, n_stop - n_up)
    else:
        Llow = np.ones(n_up) * start
        Lhigh = np.ones(n_iter - n_stop) * stop
        Lramp = np.linspace(start, stop, n_stop - n_up)
    return np.concatenate((Llow, Lramp, Lhigh))


# ----------------------------------------------------------------------------
# VMEM-budget / block-size helpers (generation aware)
# ----------------------------------------------------------------------------
_LANE_COLS = 512  # lane-dense last dim for the mel view (multiple of 128)


def _vmem_budget_bytes():
    try:
        cap = int(pltpu.get_tpu_info().vmem_capacity_bytes)
    except Exception:
        cap = 64 * 1024 * 1024  # conservative (v7x physical per-TC VMEM)
    # Use at most half of physical VMEM, capped at 48 MiB.
    return int(min(cap // 2, 48 * 1024 * 1024))


# ----------------------------------------------------------------------------
# Kernel 1: tiled mel-MSE with the small reductions fused into grid step 0
# ----------------------------------------------------------------------------
def _fused_mel_small_kernel(a_ref, b_ref, t_ref,
                            gx_ref, gz_ref, amu_ref, avar_ref,
                            smu_ref, svar_ref, p_ref, out_ref):
    a = a_ref[...].astype(jnp.float32)
    b = b_ref[...].astype(jnp.float32)
    t = t_ref[...].astype(jnp.float32)
    da = a - t
    db = b - t
    sa = jnp.sum(da * da)   # pad rows are zero in all three arrays -> contribute 0
    sb = jnp.sum(db * db)

    # lane-dense (8,128) partial tile; scalars live in sublane 0.
    sub = lax.broadcasted_iota(jnp.int32, (8, 128), 0)
    lane = lax.broadcasted_iota(jnp.int32, (8, 128), 1)
    row0 = sub == 0
    out_ref[...] = (jnp.where(row0 & (lane == 0), sa, 0.0)
                    + jnp.where(row0 & (lane == 1), sb, 0.0))

    # KB-sized reductions fused into the first grid step only.
    @pl.when(pl.program_id(0) == 0)
    def _():
        # BCEWithLogitsLoss (mean): max(x,0) - x*z + log(1 + exp(-|x|))
        x = gx_ref[...].astype(jnp.float32)
        z = gz_ref[...].astype(jnp.float32)
        bce = jnp.sum(jnp.maximum(x, 0.0) - x * z
                      + jnp.log(1.0 + jnp.exp(-jnp.abs(x)))) / jnp.float32(x.size)

        # KL(mu, var) = mean_b( 0.5 * sum_d( exp(var) + mu^2 - 1 - var ) )
        def kl(mu_ref, var_ref):
            mu = mu_ref[...].astype(jnp.float32)
            var = var_ref[...].astype(jnp.float32)
            return 0.5 * jnp.sum(jnp.exp(var) + mu * mu - 1.0 - var) \
                / jnp.float32(mu.shape[0])

        kl_a = kl(amu_ref, avar_ref)
        kl_s = kl(smu_ref, svar_ref)

        # MSE(uniform(1/C), softmax(probs, axis=1)), mean over B*C elements
        p = p_ref[...].astype(jnp.float32)
        m = jnp.max(p, axis=1, keepdims=True)
        e = jnp.exp(p - m)
        sm = e / jnp.sum(e, axis=1, keepdims=True)
        d = sm - 1.0 / jnp.float32(p.shape[1])
        adv = jnp.sum(d * d) / jnp.float32(p.size)

        out_ref[...] = out_ref[...] + (
            jnp.where(row0 & (lane == 2), bce, 0.0)
            + jnp.where(row0 & (lane == 3), kl_a, 0.0)
            + jnp.where(row0 & (lane == 4), kl_s, 0.0)
            + jnp.where(row0 & (lane == 5), adv, 0.0))


def _pad_lane_dense(x, padded_rows, cols):
    """Flatten x and zero-pad/reshape it to a (padded_rows, cols) slab."""
    flat = x.reshape(-1)
    pad = padded_rows * cols - flat.shape[0]
    if pad > 0:
        flat = jnp.pad(flat, (0, pad))
    return flat.reshape(padded_rows, cols)


def fused_mel_and_small_losses(mel_out, mel_post, mel_target,
                               gate_out, gate_target,
                               acc_mu, acc_var, spk_mu, spk_var, acc_prob):
    cols = _LANE_COLS
    total = int(np.prod(mel_target.shape))
    itemsize = jnp.dtype(mel_target.dtype).itemsize
    rows = -(-total // cols)

    budget = _vmem_budget_bytes()
    # 3 inputs x 2 pipeline buffers -> keep block bytes <= budget/8 (<=4 MiB).
    target_block_bytes = min(4 * 1024 * 1024, budget // 8)
    cap_rows = max(8, (target_block_bytes // (cols * itemsize)) // 8 * 8)
    num_tiles = max(1, -(-rows // cap_rows))
    # Balance the tiles so the final zero-pad is at most a few rows.
    tile_rows = -(-rows // num_tiles)
    tile_rows = -(-tile_rows // 8) * 8
    padded_rows = num_tiles * tile_rows

    a = _pad_lane_dense(mel_out, padded_rows, cols)
    b = _pad_lane_dense(mel_post, padded_rows, cols)
    t = _pad_lane_dense(mel_target, padded_rows, cols)

    small = (gate_out, gate_target, acc_mu, acc_var, spk_mu, spk_var, acc_prob)
    # Whole-array blocks with a constant index_map: DMA'd once, resident after.
    small_specs = [pl.BlockSpec(s.shape, lambda i: (0, 0)) for s in small]

    partials = pl.pallas_call(
        _fused_mel_small_kernel,
        out_shape=jax.ShapeDtypeStruct((8 * num_tiles, 128), jnp.float32),
        grid=(num_tiles,),
        in_specs=[pl.BlockSpec((tile_rows, cols), lambda i: (i, 0))] * 3
                 + small_specs,
        out_specs=pl.BlockSpec((8, 128), lambda i: (i, 0)),
        compiler_params=pltpu.CompilerParams(
            dimension_semantics=("parallel",),
            vmem_limit_bytes=budget),
    )(a, b, t, *small)

    n = jnp.float32(total)  # mean over ALL elements (matches nn.MSELoss)
    mse1 = jnp.sum(partials[:, 0]) / n
    mse2 = jnp.sum(partials[:, 1]) / n
    bce = jnp.sum(partials[:, 2])
    kl_acc = jnp.sum(partials[:, 3])
    kl_spk = jnp.sum(partials[:, 4])
    adv = jnp.sum(partials[:, 5])
    return mse1, mse2, bce, kl_acc, kl_spk, adv


# ----------------------------------------------------------------------------
# Kernel 2: guided attention loss (several batch elements per grid step)
# ----------------------------------------------------------------------------
def _guided_attn_kernel(ilens_ref, olens_ref, att_ref, out_ref,
                        *, bb, neg_half_inv_sigma2):
    step = pl.program_id(0)
    t_out, t_in = att_ref.shape[1], att_ref.shape[2]
    io = lax.broadcasted_iota(jnp.float32, (t_out, t_in), 0)  # output index
    ii = lax.broadcasted_iota(jnp.float32, (t_out, t_in), 1)  # input index

    wsum = jnp.float32(0.0)
    cnt = jnp.float32(0.0)
    for j in range(bb):  # static unrolled loop over the batch block
        bidx = step * bb + j
        ilen = ilens_ref[bidx].astype(jnp.float32)
        olen = olens_ref[bidx].astype(jnp.float32)
        # Guard zero-length (padded) entries: mask is all-zero, cnt adds 0.
        inv_i = 1.0 / jnp.maximum(ilen, 1.0)
        inv_o = 1.0 / jnp.maximum(olen, 1.0)
        diff = ii * inv_i - io * inv_o
        w = 1.0 - jnp.exp(diff * diff * neg_half_inv_sigma2)
        mask = (io < olen).astype(jnp.float32) * (ii < ilen).astype(jnp.float32)
        att = att_ref[j].astype(jnp.float32)
        wsum = wsum + jnp.sum(w * att * mask)
        cnt = cnt + olen * ilen  # == number of masked_select'ed elements

    sub = lax.broadcasted_iota(jnp.int32, (8, 128), 0)
    lane = lax.broadcasted_iota(jnp.int32, (8, 128), 1)
    row0 = sub == 0
    out_ref[...] = (jnp.where(row0 & (lane == 0), wsum, 0.0)
                    + jnp.where(row0 & (lane == 1), cnt, 0.0))


def guided_attention_loss(att_ws, ilens, olens, sigma, alpha):
    # Assumes att_ws.shape == (B, max(olens), max(ilens)), exactly as the
    # PyTorch module requires for `guided_attn_masks * att_ws` to broadcast.
    B, T_out, T_in = att_ws.shape
    itemsize = jnp.dtype(att_ws.dtype).itemsize
    budget = _vmem_budget_bytes()
    target_block_bytes = min(4 * 1024 * 1024, budget // 4)
    per_batch_bytes = max(T_out * T_in * itemsize, 1)
    bb = int(max(1, min(8, target_block_bytes // per_batch_bytes)))
    bb = min(bb, B)
    num_steps = -(-B // bb)
    Bp = num_steps * bb

    ilens = ilens.astype(jnp.int32)
    olens = olens.astype(jnp.int32)
    if Bp > B:
        # Zero-pad: padded entries have ilen=olen=0 -> contribute nothing.
        att_ws = jnp.pad(att_ws, ((0, Bp - B), (0, 0), (0, 0)))
        ilens = jnp.pad(ilens, (0, Bp - B))
        olens = jnp.pad(olens, (0, Bp - B))

    kernel = functools.partial(
        _guided_attn_kernel, bb=bb,
        neg_half_inv_sigma2=-1.0 / (2.0 * float(sigma) * float(sigma)))
    partials = pl.pallas_call(
        kernel,
        out_shape=jax.ShapeDtypeStruct((8 * num_steps, 128), jnp.float32),
        grid_spec=pltpu.PrefetchScalarGridSpec(
            num_scalar_prefetch=2,
            grid=(num_steps,),
            in_specs=[pl.BlockSpec((bb, T_out, T_in),
                                   lambda s, il, ol: (s, 0, 0))],
            out_specs=pl.BlockSpec((8, 128), lambda s, il, ol: (s, 0)),
        ),
        compiler_params=pltpu.CompilerParams(
            dimension_semantics=("parallel",),
            vmem_limit_bytes=budget),
    )(ilens, olens, att_ws)
    wsum = jnp.sum(partials[:, 0])
    cnt = jnp.sum(partials[:, 1])
    return jnp.float32(alpha) * wsum / jnp.maximum(cnt, 1.0)


# ----------------------------------------------------------------------------
# Tacotron2Loss (JAX / Pallas version)
# ----------------------------------------------------------------------------
class Tacotron2Loss:
    def __init__(self, preprocess_config, model_config, train_config):
        self.n_frames_per_step = model_config['decoder']['n_frames_per_step']
        self.use_guided_attn_loss = train_config['optimizer']['guided_attn']
        self.n_accent_classes = model_config['accent_encoder']['n_classes']
        self.encoder_type = model_config['accent_encoder']['encoder_type']
        self.n_speaker_classes = model_config['speaker_encoder']['n_classes']
        if self.use_guided_attn_loss:
            self.guided_sigma = train_config['optimizer']['guided_sigma']
            self.guided_lambda = train_config['optimizer']['guided_lambda']
        self.n_iter = train_config['step']['total_step']
        self.n_stopKL = train_config['linbuildkl']['n_stop']
        self.n_upKL = train_config['linbuildkl']['n_up']
        self.stopKL = train_config['linbuildkl']['stop']
        self.startKL = train_config['linbuildkl']['start']
        self.KLBtype = train_config['linbuildkl']['type']
        self.n_stopadv = train_config['linbuildadv']['n_stop']
        self.n_upadv = train_config['linbuildadv']['n_up']
        self.stopadv = train_config['linbuildadv']['stop']
        self.startadv = train_config['linbuildadv']['start']
        self.advBtype = train_config['linbuildadv']['type']
        self.acc_kl_coef = train_config['coeffs']['acc_kl']
        self.spk_kl_coef = train_config['coeffs']['spk_kl']
        self.acc_adv_coef = train_config['coeffs']['acc_adv']
        self.spk_adv_coef = train_config['coeffs']['spk_adv']
        self.reco_coef = train_config['coeffs']['reco']
        self.LKL = buildupfc(self.n_iter, self.KLBtype, self.n_stopKL,
                             self.n_upKL, start=self.startKL, stop=self.stopKL)
        self.Ladv = buildupfc(self.n_iter, self.advBtype, self.n_stopadv,
                              self.n_upadv, start=self.startadv, stop=self.stopadv)

    def forward(self, inputs, predictions, step):
        mel_target = inputs[6]
        input_lengths = inputs[4]
        output_lengths = inputs[7]
        r_len_pad = inputs[9]
        gate_target = inputs[10]
        # encoder_labels = inputs[12]  # one-hot target is unused for 'mlvae'
        # TODO(synk): non-'mlvae' encoder branches (gst/vae/gmvae/cvae) of
        # get_encoder_loss are not implemented (they reference undefined
        # globals in the reference module as well).
        mel_out, mel_out_postnet, gate_out, alignments, mlvae_stats, acc_prob = predictions

        acc_kl_lambda = float(self.LKL[step]) * self.acc_kl_coef
        spk_kl_lambda = float(self.LKL[step]) * self.spk_kl_coef

        # mel reconstruction (two MSEs) + gate BCE + mlvae KL x2 + adversarial
        # softmax-MSE, all in ONE fused pallas_call.
        mse1, mse2, bce, kl_acc, kl_spk, adv = fused_mel_and_small_losses(
            mel_out, mel_out_postnet, mel_target,
            gate_out, gate_target,
            mlvae_stats[0], mlvae_stats[1], mlvae_stats[2], mlvae_stats[3],
            acc_prob)

        mel_loss = self.reco_coef * (mse1 + mse2)
        gate_loss = bce
        acc_kl_loss = acc_kl_lambda * kl_acc
        spk_kl_loss = spk_kl_lambda * kl_spk
        encoder_loss = acc_kl_loss + spk_kl_loss

        acc_adv_lambda = float(self.Ladv[step]) * self.acc_adv_coef
        acc_adv_loss = adv * acc_adv_lambda

        if self.use_guided_attn_loss:
            olens = (output_lengths + r_len_pad) // self.n_frames_per_step
            attn_loss = guided_attention_loss(alignments, input_lengths, olens,
                                              self.guided_sigma, self.guided_lambda)
            total_loss = mel_loss + gate_loss + attn_loss + encoder_loss + acc_adv_loss
            return (total_loss, mel_loss, gate_loss, attn_loss,
                    acc_kl_loss, spk_kl_loss, acc_adv_loss)
        else:
            total_loss = mel_loss + gate_loss + encoder_loss
            # matches the PyTorch module, which returns torch.tensor([0.0])
            return (total_loss, mel_loss, gate_loss, jnp.zeros((1,), jnp.float32))


# ----------------------------------------------------------------------------
# Demo + reference check
# ----------------------------------------------------------------------------
if __name__ == "__main__":
    preprocess_config = {}
    model_config = {
        'decoder': {'n_frames_per_step': 1},
        'accent_encoder': {'n_classes': 4, 'encoder_type': 'mlvae'},
        'speaker_encoder': {'n_classes': 4},
    }
    train_config = {
        'optimizer': {'guided_attn': True, 'guided_sigma': 0.4, 'guided_lambda': 1.0},
        'step': {'total_step': 1000},
        'linbuildkl': {'n_stop': 500, 'n_up': 100, 'stop': 0.0, 'start': -5.0, 'type': 'expo'},
        'linbuildadv': {'n_stop': 500, 'n_up': 100, 'stop': 0.0, 'start': -5.0, 'type': 'expo'},
        'coeffs': {'acc_kl': 1.0, 'spk_kl': 1.0, 'acc_adv': 1.0, 'spk_adv': 1.0, 'reco': 1.0},
    }

    B, n_mel, T_dec, T_in, D, n_acc = 2, 8, 24, 16, 16, 4
    key = jax.random.PRNGKey(0)
    ks = jax.random.split(key, 12)

    mel_target = jax.random.normal(ks[0], (B, n_mel, T_dec), jnp.float32)
    mel_out = jax.random.normal(ks[1], (B, n_mel, T_dec), jnp.float32)
    mel_post = jax.random.normal(ks[2], (B, n_mel, T_dec), jnp.float32)
    gate_target = (jax.random.uniform(ks[3], (B, T_dec)) > 0.8).astype(jnp.float32)
    gate_out = jax.random.normal(ks[4], (B, T_dec), jnp.float32)
    alignments = jax.nn.softmax(
        jax.random.normal(ks[5], (B, T_dec, T_in), jnp.float32), axis=-1)
    acc_mu = 0.1 * jax.random.normal(ks[6], (B, D), jnp.float32)
    acc_logvar = 0.1 * jax.random.normal(ks[7], (B, D), jnp.float32)
    spk_mu = 0.1 * jax.random.normal(ks[8], (B, D), jnp.float32)
    spk_logvar = 0.1 * jax.random.normal(ks[9], (B, D), jnp.float32)
    acc_prob = jax.random.normal(ks[10], (B, n_acc), jnp.float32)

    input_lengths = jnp.array([T_in, 12], jnp.int32)    # max == T_in
    output_lengths = jnp.array([T_dec, 18], jnp.int32)  # max == T_dec
    r_len_pad = jnp.array([0, 0], jnp.int32)
    encoder_labels = jnp.array([0, 1], jnp.int32)

    inputs = [None] * 13
    inputs[4] = input_lengths
    inputs[6] = mel_target
    inputs[7] = output_lengths
    inputs[9] = r_len_pad
    inputs[10] = gate_target
    inputs[12] = encoder_labels

    predictions = (mel_out, mel_post, gate_out, alignments,
                   (acc_mu, acc_logvar, spk_mu, spk_logvar), acc_prob)

    step = 600
    loss_mod = Tacotron2Loss(preprocess_config, model_config, train_config)
    outs = loss_mod.forward(inputs, predictions, step=step)
    outs = jax.block_until_ready(outs)

    # ---- pure-JAX reference (same math as the PyTorch module) ----
    lkl = float(loss_mod.LKL[step])
    ladv = float(loss_mod.Ladv[step])
    r_mse1 = jnp.mean((mel_out - mel_target) ** 2)
    r_mse2 = jnp.mean((mel_post - mel_target) ** 2)
    r_mel = loss_mod.reco_coef * (r_mse1 + r_mse2)
    xg, zg = gate_out, gate_target
    r_gate = jnp.mean(jnp.maximum(xg, 0.0) - xg * zg
                      + jnp.log(1.0 + jnp.exp(-jnp.abs(xg))))
    kl_fn = lambda mu, var: jnp.mean(
        0.5 * jnp.sum(jnp.exp(var) + mu ** 2 - 1.0 - var, axis=1))
    r_acc_kl = lkl * loss_mod.acc_kl_coef * kl_fn(acc_mu, acc_logvar)
    r_spk_kl = lkl * loss_mod.spk_kl_coef * kl_fn(spk_mu, spk_logvar)
    r_adv = ladv * loss_mod.acc_adv_coef * jnp.mean(
        (jax.nn.softmax(acc_prob, axis=1) - 1.0 / n_acc) ** 2)
    sig = train_config['optimizer']['guided_sigma']
    io_r = jnp.arange(T_dec, dtype=jnp.float32)[None, :, None]
    ii_r = jnp.arange(T_in, dtype=jnp.float32)[None, None, :]
    il_r = input_lengths.astype(jnp.float32)[:, None, None]
    ol_r = ((output_lengths + r_len_pad) // 1).astype(jnp.float32)[:, None, None]
    w_r = 1.0 - jnp.exp(-((ii_r / il_r - io_r / ol_r) ** 2) / (2.0 * sig ** 2))
    m_r = (io_r < ol_r) & (ii_r < il_r)
    r_attn = jnp.sum(jnp.where(m_r, w_r * alignments, 0.0)) / jnp.sum(il_r * ol_r)
    r_total = r_mel + r_gate + r_attn + r_acc_kl + r_spk_kl + r_adv

    refs = (r_total, r_mel, r_gate, r_attn, r_acc_kl, r_spk_kl, r_adv)
    for got, ref in zip(outs, refs):
        np.testing.assert_allclose(np.asarray(got), np.asarray(ref),
                                   rtol=1e-3, atol=1e-5)

    print("KERNEL_OK")
</pallas_src>

<mosaic_0001>
module attributes {stable_mosaic.version = 11 : i64} {
  func.func @_fused_mel_small_kernel(%arg0: i32, %arg1: memref<8x512xf32, #tpu.memory_space<vmem>>, %arg2: memref<8x512xf32, #tpu.memory_space<vmem>>, %arg3: memref<8x512xf32, #tpu.memory_space<vmem>>, %arg4: memref<2x24xf32, #tpu.memory_space<vmem>>, %arg5: memref<2x24xf32, #tpu.memory_space<vmem>>, %arg6: memref<2x16xf32, #tpu.memory_space<vmem>>, %arg7: memref<2x16xf32, #tpu.memory_space<vmem>>, %arg8: memref<2x16xf32, #tpu.memory_space<vmem>>, %arg9: memref<2x16xf32, #tpu.memory_space<vmem>>, %arg10: memref<2x4xf32, #tpu.memory_space<vmem>>, %arg11: memref<8x128xf32, #tpu.memory_space<vmem>>) attributes {dimension_semantics = [#tpu.dimension_semantics<parallel>], iteration_bounds = array<i64: 1>, scalar_prefetch = 0 : i64, scratch_operands = 0 : i64, tpu.core_type = #tpu.core_type<tc>, window_params = [{transform_indices = @transform_0, window_bounds = array<i64: 8, 512>}, {transform_indices = @transform_1, window_bounds = array<i64: 8, 512>}, {transform_indices = @transform_2, window_bounds = array<i64: 8, 512>}, {pipeline_mode = #tpu.pipeline_mode<synchronous>, transform_indices = @transform_3, window_bounds = array<i64: 2, 24>}, {pipeline_mode = #tpu.pipeline_mode<synchronous>, transform_indices = @transform_4, window_bounds = array<i64: 2, 24>}, {pipeline_mode = #tpu.pipeline_mode<synchronous>, transform_indices = @transform_5, window_bounds = array<i64: 2, 16>}, {pipeline_mode = #tpu.pipeline_mode<synchronous>, transform_indices = @transform_6, window_bounds = array<i64: 2, 16>}, {pipeline_mode = #tpu.pipeline_mode<synchronous>, transform_indices = @transform_7, window_bounds = array<i64: 2, 16>}, {pipeline_mode = #tpu.pipeline_mode<synchronous>, transform_indices = @transform_8, window_bounds = array<i64: 2, 16>}, {pipeline_mode = #tpu.pipeline_mode<synchronous>, transform_indices = @transform_9, window_bounds = array<i64: 2, 4>}, {transform_indices = @transform_10, window_bounds = array<i64: 8, 128>}]} {
    %c0 = arith.constant 0 : index
    %c0_0 = arith.constant 0 : index
    %0 = vector.load %arg1[%c0, %c0_0] : memref<8x512xf32, #tpu.memory_space<vmem>>, vector<8x512xf32>
    %c0_1 = arith.constant 0 : index
    %c0_2 = arith.constant 0 : index
    %1 = vector.load %arg2[%c0_1, %c0_2] : memref<8x512xf32, #tpu.memory_space<vmem>>, vector<8x512xf32>
    %c0_3 = arith.constant 0 : index
    %c0_4 = arith.constant 0 : index
    %2 = vector.load %arg3[%c0_3, %c0_4] : memref<8x512xf32, #tpu.memory_space<vmem>>, vector<8x512xf32>
    %3 = arith.subf %0, %2 : vector<8x512xf32>
    %4 = arith.subf %1, %2 : vector<8x512xf32>
    %5 = arith.mulf %3, %3 : vector<8x512xf32>
    %6 = vector.shape_cast %5 : vector<8x512xf32> to vector<1x8x512xf32>
    %cst = arith.constant dense<0.000000e+00> : vector<1xf32>
    %7 = vector.multi_reduction <add>, %6, %cst [1, 2] : vector<1x8x512xf32> to vector<1xf32>
    %8 = vector.shape_cast %7 : vector<1xf32> to vector<1x1x1xf32>
    %9 = vector.extract %8[0, 0, 0] : f32 from vector<1x1x1xf32>
    %10 = arith.mulf %4, %4 : vector<8x512xf32>
    %11 = vector.shape_cast %10 : vector<8x512xf32> to vector<1x8x512xf32>
    %cst_5 = arith.constant dense<0.000000e+00> : vector<1xf32>
    %12 = vector.multi_reduction <add>, %11, %cst_5 [1, 2] : vector<1x8x512xf32> to vector<1xf32>
    %13 = vector.shape_cast %12 : vector<1xf32> to vector<1x1x1xf32>
    %14 = vector.extract %13[0, 0, 0] : f32 from vector<1x1x1xf32>
    %15 = tpu.iota {dimensions = array<i32: 0>} : vector<8x128xi32>
    %16 = tpu.iota {dimensions = array<i32: 1>} : vector<8x128xi32>
    %c0_i32 = arith.constant 0 : i32
    %17 = vector.broadcast %c0_i32 : i32 to vector<8x128xi32>
    %18 = arith.cmpi eq, %15, %17 : vector<8x128xi32>
    %c0_i32_6 = arith.constant 0 : i32
    %19 = vector.broadcast %c0_i32_6 : i32 to vector<8x128xi32>
    %20 = arith.cmpi eq, %16, %19 : vector<8x128xi32>
    %21 = arith.andi %18, %20 : vector<8x128xi1>
    %cst_7 = arith.constant 0.000000e+00 : f32
    %22 = vector.broadcast %9 : f32 to vector<8x128xf32>
    %23 = vector.broadcast %cst_7 : f32 to vector<8x128xf32>
    %24 = arith.select %21, %22, %23 : vector<8x128xi1>, vector<8x128xf32>
    %c1_i32 = arith.constant 1 : i32
    %25 = vector.broadcast %c1_i32 : i32 to vector<8x128xi32>
    %26 = arith.cmpi eq, %16, %25 : vector<8x128xi32>
    %27 = arith.andi %18, %26 : vector<8x128xi1>
    %cst_8 = arith.constant 0.000000e+00 : f32
    %28 = vector.broadcast %14 : f32 to vector<8x128xf32>
    %29 = vector.broadcast %cst_8 : f32 to vector<8x128xf32>
    %30 = arith.select %27, %28, %29 : vector<8x128xi1>, vector<8x128xf32>
    %31 = arith.addf %24, %30 : vector<8x128xf32>
    %c0_9 = arith.constant 0 : index
    %c0_10 = arith.constant 0 : index
    %32 = vector.load %arg11[%c0_9, %c0_10] : memref<8x128xf32, #tpu.memory_space<vmem>>, vector<8x128xf32>
    tpu.vector_store %arg11[%c0_9, %c0_10], %31 {strides = array<i32>} : memref<8x128xf32, #tpu.memory_space<vmem>>, vector<8x128xf32>,
    %c0_i32_11 = arith.constant 0 : i32
    %33 = arith.cmpi eq, %arg0, %c0_i32_11 : i32
    %34 = arith.extui %33 : i1 to i32
    %c0_i32_12 = arith.constant 0 : i32
    %35 = arith.cmpi ne, %34, %c0_i32_12 : i32
    scf.if %35 {
      %c0_13 = arith.constant 0 : index
      %c0_14 = arith.constant 0 : index
      %36 = vector.load %arg4[%c0_13, %c0_14] : memref<2x24xf32, #tpu.memory_space<vmem>>, vector<2x24xf32>
      %c0_15 = arith.constant 0 : index
      %c0_16 = arith.constant 0 : index
      %37 = vector.load %arg5[%c0_15, %c0_16] : memref<2x24xf32, #tpu.memory_space<vmem>>, vector<2x24xf32>
      %cst_17 = arith.constant 0.000000e+00 : f32
      %38 = vector.broadcast %cst_17 : f32 to vector<2x24xf32>
      %39 = arith.maximumf %36, %38 : vector<2x24xf32>
      %40 = arith.mulf %36, %37 : vector<2x24xf32>
      %41 = arith.subf %39, %40 : vector<2x24xf32>
      %42 = math.absf %36 : vector<2x24xf32>
      %cst_18 = arith.constant 0.000000e+00 : f32
      %43 = vector.broadcast %cst_18 : f32 to vector<2x24xf32>
      %44 = arith.subf %43, %42 : vector<2x24xf32>
      %45 = math.exp %44 : vector<2x24xf32>
      %cst_19 = arith.constant 1.000000e+00 : f32
      %46 = vector.broadcast %cst_19 : f32 to vector<2x24xf32>
      %47 = arith.addf %46, %45 : vector<2x24xf32>
      %48 = math.log %47 : vector<2x24xf32>
      %49 = arith.addf %41, %48 : vector<2x24xf32>
      %50 = vector.shape_cast %49 : vector<2x24xf32> to vector<1x2x24xf32>
      %cst_20 = arith.constant dense<0.000000e+00> : vector<1xf32>
      %51 = vector.multi_reduction <add>, %50, %cst_20 [1, 2] : vector<1x2x24xf32> to vector<1xf32>
      %52 = vector.shape_cast %51 : vector<1xf32> to vector<1x1x1xf32>
      %53 = vector.extract %52[0, 0, 0] : f32 from vector<1x1x1xf32>
      %cst_21 = arith.constant 4.800000e+01 : f32
      %54 = arith.divf %53, %cst_21 : f32
      %c0_22 = arith.constant 0 : index
      %c0_23 = arith.constant 0 : index
      %55 = vector.load %arg6[%c0_22, %c0_23] : memref<2x16xf32, #tpu.memory_space<vmem>>, vector<2x16xf32>
      %c0_24 = arith.constant 0 : index
      %c0_25 = arith.constant 0 : index
      %56 = vector.load %arg7[%c0_24, %c0_25] : memref<2x16xf32, #tpu.memory_space<vmem>>, vector<2x16xf32>
      %57 = math.exp %56 : vector<2x16xf32>
      %58 = arith.mulf %55, %55 : vector<2x16xf32>
      %59 = arith.addf %57, %58 : vector<2x16xf32>
      %cst_26 = arith.constant 1.000000e+00 : f32
      %60 = vector.broadcast %cst_26 : f32 to vector<2x16xf32>
      %61 = arith.subf %59, %60 : vector<2x16xf32>
      %62 = arith.subf %61, %56 : vector<2x16xf32>
      %63 = vector.shape_cast %62 : vector<2x16xf32> to vector<1x2x16xf32>
      %cst_27 = arith.constant dense<0.000000e+00> : vector<1xf32>
      %64 = vector.multi_reduction <add>, %63, %cst_27 [1, 2] : vector<1x2x16xf32> to vector<1xf32>
      %65 = vector.shape_cast %64 : vector<1xf32> to vector<1x1x1xf32>
      %66 = vector.extract %65[0, 0, 0] : f32 from vector<1x1x1xf32>
      %cst_28 = arith.constant 5.000000e-01 : f32
      %67 = arith.mulf %cst_28, %66 : f32
      %cst_29 = arith.constant 2.000000e+00 : f32
      %68 = arith.divf %67, %cst_29 : f32
      %c0_30 = arith.constant 0 : index
      %c0_31 = arith.constant 0 : index
      %69 = vector.load %arg8[%c0_30, %c0_31] : memref<2x16xf32, #tpu.memory_space<vmem>>, vector<2x16xf32>
      %c0_32 = arith.constant 0 : index
      %c0_33 = arith.constant 0 : index
      %70 = vector.load %arg9[%c0_32, %c0_33] : memref<2x16xf32, #tpu.memory_space<vmem>>, vector<2x16xf32>
      %71 = math.exp %70 : vector<2x16xf32>
      %72 = arith.mulf %69, %69 : vector<2x16xf32>
      %73 = arith.addf %71, %72 : vector<2x16xf32>
      %cst_34 = arith.constant 1.000000e+00 : f32
      %74 = vector.broadcast %cst_34 : f32 to vector<2x16xf32>
      %75 = arith.subf %73, %74 : vector<2x16xf32>
      %76 = arith.subf %75, %70 : vector<2x16xf32>
      %77 = vector.shape_cast %76 : vector<2x16xf32> to vector<1x2x16xf32>
      %cst_35 = arith.constant dense<0.000000e+00> : vector<1xf32>
      %78 = vector.multi_reduction <add>, %77, %cst_35 [1, 2] : vector<1x2x16xf32> to vector<1xf32>
      %79 = vector.shape_cast %78 : vector<1xf32> to vector<1x1x1xf32>
      %80 = vector.extract %79[0, 0, 0] : f32 from vector<1x1x1xf32>
      %cst_36 = arith.constant 5.000000e-01 : f32
      %81 = arith.mulf %cst_36, %80 : f32
      %cst_37 = arith.constant 2.000000e+00 : f32
      %82 = arith.divf %81, %cst_37 : f32
      %c0_38 = arith.constant 0 : index
      %c0_39 = arith.constant 0 : index
      %83 = vector.load %arg10[%c0_38, %c0_39] : memref<2x4xf32, #tpu.memory_space<vmem>>, vector<2x4xf32>
      %cst_40 = arith.constant dense<0xFF800000> : vector<2xf32>
      %84 = vector.multi_reduction <maximumf>, %83, %cst_40 [1] : vector<2x4xf32> to vector<2xf32>
      %85 = vector.shape_cast %84 : vector<2xf32> to vector<2x1xf32>
      %86 = vector.broadcast %85 : vector<2x1xf32> to vector<2x4xf32>
      %87 = arith.subf %83, %86 : vector<2x4xf32>
      %88 = math.exp %87 : vector<2x4xf32>
      %cst_41 = arith.constant dense<0.000000e+00> : vector<2xf32>
      %89 = vector.multi_reduction <add>, %88, %cst_41 [1] : vector<2x4xf32> to vector<2xf32>
      %90 = vector.shape_cast %89 : vector<2xf32> to vector<2x1xf32>
      %91 = vector.broadcast %90 : vector<2x1xf32> to vector<2x4xf32>
      %92 = arith.divf %88, %91 : vector<2x4xf32>
      %cst_42 = arith.constant 1.000000e+00 : f32
      %cst_43 = arith.constant 4.000000e+00 : f32
      %93 = arith.divf %cst_42, %cst_43 : f32
      %94 = vector.broadcast %93 : f32 to vector<2x4xf32>
      %95 = arith.subf %92, %94 : vector<2x4xf32>
      %96 = arith.mulf %95, %95 : vector<2x4xf32>
      %97 = vector.shape_cast %96 : vector<2x4xf32> to vector<1x2x4xf32>
      %cst_44 = arith.constant dense<0.000000e+00> : vector<1xf32>
      %98 = vector.multi_reduction <add>, %97, %cst_44 [1, 2] : vector<1x2x4xf32> to vector<1xf32>
      %99 = vector.shape_cast %98 : vector<1xf32> to vector<1x1x1xf32>
      %100 = vector.extract %99[0, 0, 0] : f32 from vector<1x1x1xf32>
      %cst_45 = arith.constant 8.000000e+00 : f32
      %101 = arith.divf %100, %cst_45 : f32
      %c0_46 = arith.constant 0 : index
      %c0_47 = arith.constant 0 : index
      %102 = vector.load %arg11[%c0_46, %c0_47] : memref<8x128xf32, #tpu.memory_space<vmem>>, vector<8x128xf32>
      %c2_i32 = arith.constant 2 : i32
      %103 = vector.broadcast %c2_i32 : i32 to vector<8x128xi32>
      %104 = arith.cmpi eq, %16, %103 : vector<8x128xi32>
      %105 = arith.andi %18, %104 : vector<8x128xi1>
      %cst_48 = arith.constant 0.000000e+00 : f32
      %106 = vector.broadcast %54 : f32 to vector<8x128xf32>
      %107 = vector.broadcast %cst_48 : f32 to vector<8x128xf32>
      %108 = arith.select %105, %106, %107 : vector<8x128xi1>, vector<8x128xf32>
      %c3_i32 = arith.constant 3 : i32
      %109 = vector.broadcast %c3_i32 : i32 to vector<8x128xi32>
      %110 = arith.cmpi eq, %16, %109 : vector<8x128xi32>
      %111 = arith.andi %18, %110 : vector<8x128xi1>
      %cst_49 = arith.constant 0.000000e+00 : f32
      %112 = vector.broadcast %68 : f32 to vector<8x128xf32>
      %113 = vector.broadcast %cst_49 : f32 to vector<8x128xf32>
      %114 = arith.select %111, %112, %113 : vector<8x128xi1>, vector<8x128xf32>
      %115 = arith.addf %108, %114 : vector<8x128xf32>
      %c4_i32 = arith.constant 4 : i32
      %116 = vector.broadcast %c4_i32 : i32 to vector<8x128xi32>
      %117 = arith.cmpi eq, %16, %116 : vector<8x128xi32>
      %118 = arith.andi %18, %117 : vector<8x128xi1>
      %cst_50 = arith.constant 0.000000e+00 : f32
      %119 = vector.broadcast %82 : f32 to vector<8x128xf32>
      %120 = vector.broadcast %cst_50 : f32 to vector<8x128xf32>
      %121 = arith.select %118, %119, %120 : vector<8x128xi1>, vector<8x128xf32>
      %122 = arith.addf %115, %121 : vector<8x128xf32>
      %c5_i32 = arith.constant 5 : i32
      %123 = vector.broadcast %c5_i32 : i32 to vector<8x128xi32>
      %124 = arith.cmpi eq, %16, %123 : vector<8x128xi32>
      %125 = arith.andi %18, %124 : vector<8x128xi1>
      %cst_51 = arith.constant 0.000000e+00 : f32
      %126 = vector.broadcast %101 : f32 to vector<8x128xf32>
      %127 = vector.broadcast %cst_51 : f32 to vector<8x128xf32>
      %128 = arith.select %125, %126, %127 : vector<8x128xi1>, vector<8x128xf32>
      %129 = arith.addf %122, %128 : vector<8x128xf32>
      %130 = arith.addf %102, %129 : vector<8x128xf32>
      %c0_52 = arith.constant 0 : index
      %c0_53 = arith.constant 0 : index
      %131 = vector.load %arg11[%c0_52, %c0_53] : memref<8x128xf32, #tpu.memory_space<vmem>>, vector<8x128xf32>
      tpu.vector_store %arg11[%c0_52, %c0_53], %130 {strides = array<i32>} : memref<8x128xf32, #tpu.memory_space<vmem>>, vector<8x128xf32>,
    } else {
    }
    return
  }
  func.func @transform_0(%arg0: i32) -> (i32, i32) {
    %c0_i32 = arith.constant 0 : i32
    %c0_i32_0 = arith.constant 0 : i32
    return %arg0, %c0_i32 : i32, i32
  }
  func.func @transform_1(%arg0: i32) -> (i32, i32) {
    %c0_i32 = arith.constant 0 : i32
    %c0_i32_0 = arith.constant 0 : i32
    return %arg0, %c0_i32 : i32, i32
  }
  func.func @transform_2(%arg0: i32) -> (i32, i32) {
    %c0_i32 = arith.constant 0 : i32
    %c0_i32_0 = arith.constant 0 : i32
    return %arg0, %c0_i32 : i32, i32
  }
  func.func @transform_3(%arg0: i32) -> (i32, i32) {
    %c0_i32 = arith.constant 0 : i32
    %c0_i32_0 = arith.constant 0 : i32
    %c0_i32_1 = arith.constant 0 : i32
    return %c0_i32, %c0_i32_0 : i32, i32
  }
  func.func @transform_4(%arg0: i32) -> (i32, i32) {
    %c0_i32 = arith.constant 0 : i32
    %c0_i32_0 = arith.constant 0 : i32
    %c0_i32_1 = arith.constant 0 : i32
    return %c0_i32, %c0_i32_0 : i32, i32
  }
  func.func @transform_5(%arg0: i32) -> (i32, i32) {
    %c0_i32 = arith.constant 0 : i32
    %c0_i32_0 = arith.constant 0 : i32
    %c0_i32_1 = arith.constant 0 : i32
    return %c0_i32, %c0_i32_0 : i32, i32
  }
  func.func @transform_6(%arg0: i32) -> (i32, i32) {
    %c0_i32 = arith.constant 0 : i32
    %c0_i32_0 = arith.constant 0 : i32
    %c0_i32_1 = arith.constant 0 : i32
    return %c0_i32, %c0_i32_0 : i32, i32
  }
  func.func @transform_7(%arg0: i32) -> (i32, i32) {
    %c0_i32 = arith.constant 0 : i32
    %c0_i32_0 = arith.constant 0 : i32
    %c0_i32_1 = arith.constant 0 : i32
    return %c0_i32, %c0_i32_0 : i32, i32
  }
  func.func @transform_8(%arg0: i32) -> (i32, i32) {
    %c0_i32 = arith.constant 0 : i32
    %c0_i32_0 = arith.constant 0 : i32
    %c0_i32_1 = arith.constant 0 : i32
    return %c0_i32, %c0_i32_0 : i32, i32
  }
  func.func @transform_9(%arg0: i32) -> (i32, i32) {
    %c0_i32 = arith.constant 0 : i32
    %c0_i32_0 = arith.constant 0 : i32
    %c0_i32_1 = arith.constant 0 : i32
    return %c0_i32, %c0_i32_0 : i32, i32
  }
  func.func @transform_10(%arg0: i32) -> (i32, i32) {
    %c0_i32 = arith.constant 0 : i32
    %c0_i32_0 = arith.constant 0 : i32
    return %arg0, %c0_i32 : i32, i32
  }
}

</mosaic_0001>

<bundles_post_ra>
// kernel: tpu_custom_call.1
= control target key start
LH: loop header
LB: loop body
LE: loop exit
PB: predicated region body
PF: predicated region fallthrough
CT: control target
= control target key end

     0   :  { %15 = vsyncpa [#allocation3], 0  ;;  %s554_s0 = inlined_call_operand.hbm [shape: f32[8,512], index: 0, kind: input, shape index: {}]   ;;  %s555_s1 = inlined_call_operand.hbm [shape: f32[8,512], index: 1, kind: input, shape index: {}]   ;;  %s556_s2 = inlined_call_operand.hbm [shape: f32[8,512], index: 2, kind: input, shape index: {}]   ;;  %s557_s3 = inlined_call_operand.vmem [shape: f32[2,24], index: 3, kind: input, shape index: {}]   ;;  %s558_s4 = inlined_call_operand.vmem [shape: f32[2,24], index: 4, kind: input, shape index: {}]   ;;  %s559_s5 = inlined_call_operand.vmem [shape: f32[2,16], index: 5, kind: input, shape index: {}]   ;;  %s560_s6 = inlined_call_operand.vmem [shape: f32[2,16], index: 6, kind: input, shape index: {}]   ;;  %s561_s7 = inlined_call_operand.vmem [shape: f32[2,16], index: 7, kind: input, shape index: {}]   ;;  %s562_s8 = inlined_call_operand.vmem [shape: f32[2,16], index: 8, kind: input, shape index: {}]   ;;  %s563_s9 = inlined_call_operand.vmem [shape: f32[2,4], index: 9, kind: input, shape index: {}]   ;;  %s564_s10 = inlined_call_operand.hbm [shape: f32[8,128], index: 10, kind: output, shape index: {}]  }
   0x1   :  { %16 = vsyncpa [#allocation6], 0 }
   0x2   :  { %17 = vsyncpa [#allocation4], 0  ;;  %s405_s13 = smov [#allocation5]   ;;  %s406_s15 = smov [#allocation2]  }
   0x3   :  { %s34_s14 = sshll.u32 %s405_s13, 4  ;;  %s24_s16 = sshll.u32 %s406_s15, 4  ;;  %s35_s14 = int_to_ptr.vmem [resolvable:$true] %s34_s14  ;;  %s25_s16 = int_to_ptr.vmem [resolvable:$true] %s24_s16 }
   0x4   :  { %s311_s19 = scalar_lea.hbm %s555_s1, 512 }
   0x5   :  { %p312_p0 = scmp.ne.s32.totalorder %s555_s1, %s311_s19  ;;  %p315_p1 = scmp.lt.u32.totalorder %s311_s19, %s555_s1 }
   0x7   :  { %p317_p2 = pnand %p315_p1, %p312_p0 }
   0x9   :  { %320 = shalt.err (!%p317_p2)
}
   0xa   :  { %s321_s24 = scalar_lea.vmem %s35_s14, 512  ;;  %p326_p4 = scmp.lt.s32.totalorder %s35_s14, %s35_s14 }
   0xb   :  { %p322_p3 = scmp.ne.s32.totalorder %s35_s14, %s321_s24  ;;  %p327_p5 = scmp.lt.s32.totalorder %s321_s24, %s321_s24 }
   0xd   :  { %p328_p6 = por %p327_p5, %p326_p4 }
   0xf   :  { %p329_p7 = pnand %p328_p6, %p322_p3 }
  0x11   :  { %332 = shalt.err (!%p329_p7)
}
  0x12   :  { %37 = dma.hbm_to_vmem [thread:$0]  %s555_s1, 512, %s35_s14, [#allocation6]  }
  0x13   :  { %s333_s29 = scalar_lea.hbm %s554_s0, 512 }
  0x14   :  { %p334_p8 = scmp.ne.s32.totalorder %s554_s0, %s333_s29  ;;  %p337_p9 = scmp.lt.u32.totalorder %s333_s29, %s554_s0 }
  0x16   :  { %p339_p10 = pnand %p337_p9, %p334_p8 }
  0x18   :  { %342 = shalt.err (!%p339_p10)
}
  0x19   :  { %s343_s15 = scalar_lea.vmem %s25_s16, 512  ;;  %p348_p12 = scmp.lt.s32.totalorder %s25_s16, %s25_s16 }
  0x1a   :  { %p344_p11 = scmp.ne.s32.totalorder %s25_s16, %s343_s15  ;;  %p349_p13 = scmp.lt.s32.totalorder %s343_s15, %s343_s15 }
  0x1c   :  { %p350_p0 = por %p349_p13, %p348_p12 }
  0x1e   :  { %p351_p1 = pnand %p350_p0, %p344_p11 }
  0x20   :  { %354 = shalt.err (!%p351_p1)
}
  0x21   :  { %27 = dma.hbm_to_vmem [thread:$0]  %s554_s0, 512, %s25_s16, [#allocation3]  }
  0x22   :  { %s407_s17 = smov [#allocation7]   ;;  %s355_s21 = scalar_lea.hbm %s556_s2, 512 }
  0x23   :  { %s44_s18 = sshll.u32 %s407_s17, 4  ;;  %p356_p2 = scmp.ne.s32.totalorder %s556_s2, %s355_s21  ;;  %s45_s18 = int_to_ptr.vmem [resolvable:$true] %s44_s18 }
  0x24   :  { %p359_p3 = scmp.lt.u32.totalorder %s355_s21, %s556_s2 }
  0x26   :  { %p361_p4 = pnand %p359_p3, %p356_p2 }
  0x28   :  { %364 = shalt.err (!%p361_p4)
}
  0x29   :  { %s365_s26 = scalar_lea.vmem %s45_s18, 512  ;;  %p370_p6 = scmp.lt.s32.totalorder %s45_s18, %s45_s18 }
  0x2a   :  { %p366_p5 = scmp.ne.s32.totalorder %s45_s18, %s365_s26  ;;  %p371_p7 = scmp.lt.s32.totalorder %s365_s26, %s365_s26 }
  0x2c   :  { %p372_p8 = por %p371_p7, %p370_p6 }
  0x2e   :  { %p373_p9 = pnand %p372_p8, %p366_p5 }
  0x30   :  { %376 = shalt.err (!%p373_p9)
}
  0x31   :  { %47 = dma.hbm_to_vmem [thread:$0]  %s556_s2, 512, %s45_s18, [#allocation6]  }
  0x32   :  { %399 = dma.done.wait [#allocation3], 512  }
  0x33   :  { %400 = vsyncadd [#allocation3], 4294966784 }
  0x34   :  { %401 = dma.done.wait [#allocation6], 1024  }
  0x35   :  { %402 = vsyncadd [#allocation6], 4294966272  ;;  %vm215_vm0 = vcmask 25600   ;;  %v214_v0 = vld [vmem:[%s563_s9] sm:$0x3]  ;;  %v72_v3 = vld [vmem:[#allocation2 + $0x8] sm:$0xff] }
  0x36   :  { %v216_v1 = vsel %vm215_vm0, %v214_v0, -inf  ;;  %v71_v2 = vld [vmem:[#allocation2] sm:$0xff]  ;;  %v73_v4 = vld [vmem:[#allocation2 + $0x10] sm:$0xff]  ;;  %v74_v5 = vld [vmem:[#allocation2 + $0x18] sm:$0xff]  ;;  %vm155_vm1 = vcmask 189440   ;;  %vm177_vm2 = vcmask 123904  }
  0x37   :  { %217 = vmax.xlane.f32.xlu0 %v216_v1  ;;  %v79_v6 = vld [vmem:[#allocation7] sm:$0xff]  ;;  %v80_v7 = vld [vmem:[#allocation7 + $0x8] sm:$0xff]  ;;  %v81_v8 = vld [vmem:[#allocation7 + $0x10] sm:$0xff]  ;;  %s408_s25 = smov [#allocation8]  }
  0x38   :  { %v82_v9 = vld [vmem:[#allocation7 + $0x18] sm:$0xff]  ;;  %v83_v10 = vsub.f32 %v71_v2, %v79_v6  ;;  %v84_v11 = vsub.f32 %v72_v3, %v80_v7  ;;  %v75_v12 = vld [vmem:[#allocation5] sm:$0xff]  ;;  %v85_v13 = vsub.f32 %v73_v4, %v81_v8  ;;  %v76_v15 = vld [vmem:[#allocation5 + $0x8] sm:$0xff]  ;;  %s270_s26 = sshll.u32 %s408_s25, 4  ;;  %s271_s26 = int_to_ptr.vmem [resolvable:$true] %s270_s26 }
  0x39   :  { %v86_v14 = vsub.f32 %v74_v5, %v82_v9  ;;  %v77_v16 = vld [vmem:[#allocation5 + $0x10] sm:$0xff]  ;;  %v78_v17 = vld [vmem:[#allocation5 + $0x18] sm:$0xff]  ;;  %v87_v18 = vsub.f32 %v75_v12, %v79_v6  ;;  %v88_v21 = vsub.f32 %v76_v15, %v80_v7  ;;  %v142_v36 = vld [vmem:[%s557_s3] sm:$0x3]  ;;  %s377_s0 = scalar_lea.vmem %s271_s26, 128  ;;  %p382_p11 = scmp.lt.s32.totalorder %s271_s26, %s271_s26 }
  0x3a   :  { %v91_v19 = vmul.f32 %v83_v10, %v83_v10  ;;  %v92_v20 = vmul.f32 %v84_v11, %v84_v11  ;;  %v89_v22 = vsub.f32 %v77_v16, %v81_v8  ;;  %v93_v23 = vmul.f32 %v85_v13, %v85_v13  ;;  %v170_v44 = vld [vmem:[%s560_s6] sm:$0x3]  ;;  %p378_p10 = scmp.ne.s32.totalorder %s271_s26, %s377_s0  ;;  %p383_p12 = scmp.lt.s32.totalorder %s377_s0, %s377_s0 }
  0x3b   :  { %v90_v24 = vsub.f32 %v78_v17, %v82_v9  ;;  %v107_v25 = vmul.f32 %v87_v18, %v87_v18  ;;  %v94_v26 = vmul.f32 %v86_v14, %v86_v14  ;;  %v108_v28 = vmul.f32 %v88_v21, %v88_v21  ;;  %v193_v47 = vld [vmem:[%s562_s8] sm:$0x3] }
  0x3c   :  { %v95_v27 = vadd.f32 %v92_v20, %v91_v19  ;;  %v109_v29 = vmul.f32 %v89_v22, %v89_v22  ;;  %v147_v37 = vand.u32 2147483647, %v142_v36  ;;  %v171_v46 = vmul.f32 1.442695, %v170_v44  ;;  %v143_v51 = vld [vmem:[%s558_s4] sm:$0x3]  ;;  %p384_p13 = por %p383_p12, %p382_p11 }
  0x3d   :  { %v110_v31 = vmul.f32 %v90_v24, %v90_v24  ;;  %v111_v32 = vadd.f32 %v108_v28, %v107_v25  ;;  %v194_v49 = vmul.f32 1.442695, %v193_v47  ;;  %v169_v52 = vld [vmem:[%s559_s5] sm:$0x3]  ;;  %v144_v53 = vmax.f32 %v142_v36, 0.0 }
  0x3e   :  { %v96_v30 = vadd.f32 %v95_v27, %v93_v23  ;;  %v148_v38 = vsub.f32 0.0, %v147_v37  ;;  %v145_v54 = vmul.f32 %v143_v51, %v142_v36  ;;  %v173_v55 = vmul.f32 %v169_v52, %v169_v52  ;;  %v192_v57 = vld [vmem:[%s561_s7] sm:$0x3]  ;;  %p385_p0 = pnand %p384_p13, %p378_p10 }
  0x3f   :  { %v112_v34 = vadd.f32 %v111_v32, %v109_v29  ;;  %v196_v61 = vmul.f32 %v192_v57, %v192_v57  ;;  %v123_v57 = vlaneseq }
  0x40   :  { %v97_v33 = vadd.f32 %v96_v30, %v94_v26  ;;  %v149_v40 = vmul.f32 1.442695, %v148_v38  ;;  %v146_v59 = vsub.f32 %v144_v53, %v145_v54 }
  0x41   :  { %v113_v35 = vadd.f32 %v112_v34, %v110_v31 }
  0x42   :  { %98 = vadd.xlane.f32.xlu1 %v97_v33  ;;  %299 = vpow2.f32 %v149_v40 }
  0x46   :  { %114 = vadd.xlane.f32.xlu1 %v113_v35 }
  0x4c   :  { %v300_v43 = vpop.eup %299 }
  0x4d   :  { %v151_v45 = vadd.f32 1.0, %v300_v43 }
  0xc4   :  { %v218_v39 = vpop.xlane.xlu0 %217 }
  0xc5   :  { %v219_v41 = vsub.f32 %v214_v0, %v218_v39 }
  0xc7   :  { %v220_v42 = vmul.f32 1.442695, %v219_v41 }
  0xc9   :  { %301 = vpow2.f32 %v220_v42 }
  0xca   :  { %303 = vlog2.f32 %v151_v45 }
  0xcb   :  { %305 = vpow2.f32 %v171_v46 }
  0xcc   :  { %307 = vpow2.f32 %v194_v49 }
  0xcf   :  { %v99_v9 = vpop.xlane.xlu1 %98 }
  0xd0   :  { %v100_v10 = vrot.slane %v99_v9, 4 }
  0xd2   :  { %v101_v11 = vadd.f32 %v100_v10, %v99_v9 }
  0xd3   :  { %v302_v48 = vpop.eup %301  ;;  %v115_v12 = vpop.xlane.xlu1 %114 }
  0xd4   :  { %v222_v50 = vsel %vm215_vm0, %v302_v48, 0.0  ;;  %v304_v56 = vpop.eup %303  ;;  %v102_v13 = vrot.slane %v101_v11, 2  ;;  %v116_v14 = vrot.slane %v115_v12, 4 }
  0xd5   :  { %223 = vadd.xlane.f32.xlu0 %v222_v50  ;;  %v306_v58 = vpop.eup %305  ;;  %v153_v60 = vmul.f32 0.6931472, %v304_v56 }
  0xd6   :  { %v308_v62 = vpop.eup %307  ;;  %v174_v63 = vadd.f32 %v306_v58, %v173_v55  ;;  %v117_v15 = vadd.f32 %v116_v14, %v115_v12  ;;  %v103_v16 = vadd.f32 %v102_v13, %v101_v11  ;;  %v124_v58 = vshrl.u32 %v123_v57, 7 }
  0xd7   :  { %v154_v0 = vadd.f32 %v153_v60, %v146_v59  ;;  %v197_v1 = vadd.f32 %v308_v62, %v196_v61  ;;  %v126_v59 = vand.u32 127, %v123_v57 }
  0xd8   :  { %v280_v2 = vadd.f32 -1.0, %v174_v63  ;;  %v118_v17 = vrot.slane %v117_v15, 2  ;;  %v104_v18 = vrot.slane %v103_v16, 1  ;;  %vm127_vm5 = vcmp.eq.s32.totalorder %v124_v58, 0 }
  0xd9   :  { %v156_v3 = vsel %vm155_vm1, %v154_v0, 0.0  ;;  %v281_v4 = vadd.f32 -1.0, %v197_v1  ;;  %vm243_vm3 = vcmp.eq.s32.totalorder %v126_v59, 2  ;;  %vm247_vm4 = vcmp.eq.s32.totalorder %v126_v59, 3 }
  0xda   :  { %157 = vadd.xlane.f32.xlu0 %v156_v3  ;;  %v176_v5 = vsub.f32 %v280_v2, %v170_v44  ;;  %v105_v19 = vadd.f32 %v104_v18, %v103_v16  ;;  %v119_v20 = vadd.f32 %v118_v17, %v117_v15  ;;  %vm529_vm6 = vmand %vm127_vm5, %vm243_vm3  ;;  %vm252_vm8 = vcmp.eq.s32.totalorder %v126_v59, 4 }
  0xdb   :  { %v199_v6 = vsub.f32 %v281_v4, %v193_v47  ;;  %vm248_vm7 = vmand %vm127_vm5, %vm247_vm4  ;;  %vm128_vm9 = vcmp.eq.s32.totalorder %v126_v59, 0  ;;  %vm132_vm10 = vcmp.eq.s32.totalorder %v126_v59, 1  ;;  %vm257_vm13 = vcmp.eq.s32.totalorder %v126_v59, 5 }
  0xdc   :  { %v178_v7 = vsel %vm177_vm2, %v176_v5, 0.0  ;;  %283 = vpush %v105_v19  ;;  %v120_v21 = vrot.slane %v119_v20, 1  ;;  %vm253_vm11 = vmand %vm127_vm5, %vm252_vm8 }
  0xdd   :  { %179 = vadd.xlane.f32.xlu1 %v178_v7  ;;  %v200_v8 = vsel %vm177_vm2, %v199_v6, 0.0  ;;  %vm129_vm12 = vmand %vm127_vm5, %vm128_vm9 }
  0xde   :  { %201 = vadd.xlane.f32.xlu0 %v200_v8  ;;  %v121_v22 = vadd.f32 %v120_v21, %v119_v20  ;;  %vm133_vm14 = vmand %vm127_vm5, %vm132_vm10 }
  0xdf   :  { %vm258_vm15 = vmand %vm127_vm5, %vm257_vm13 }
  0xe0   :  { %285 = vpush %v121_v22 }
 0x10d   :  { %s524_s4 = spop %283 }
 0x10e   :  { %v130_v2 = vstv %s524_s4 }
 0x10f   :  { %v131_v6 = vsel %vm129_vm12, %v130_v2, 0.0 }
 0x111   :  { %s526_s5 = spop %285 }
 0x112   :  { %v134_v3 = vstv %s526_s5 }
 0x113   :  { %v135_v7 = vsel %vm133_vm14, %v134_v3, 0.0 }
 0x114   :  { %v136_v11 = vadd.f32 %v135_v7, %v131_v6 }
 0x162   :  { %v224_v23 = vpop.xlane.xlu0 %223 }
 0x163   :  { %309 = vrcp.f32 %v224_v23 }
 0x167   :  { %v158_v27 = vpop.xlane.xlu0 %157 }
 0x168   :  { %v159_v28 = vrot.slane %v158_v27, 4 }
 0x16a   :  { %v160_v30 = vadd.f32 %v159_v28, %v158_v27  ;;  %v180_v31 = vpop.xlane.xlu1 %179 }
 0x16b   :  { %v181_v33 = vrot.slane %v180_v31, 4  ;;  %v202_v34 = vpop.xlane.xlu0 %201 }
 0x16c   :  { %v161_v35 = vrot.slane %v160_v30, 2  ;;  %v203_v36 = vrot.slane %v202_v34, 4 }
 0x16d   :  { %v310_v24 = vpop.eup %309  ;;  %v182_v37 = vadd.f32 %v181_v33, %v180_v31 }
 0x16e   :  { %v226_v25 = vmul.f32 %v310_v24, %v302_v48  ;;  %v204_v38 = vadd.f32 %v203_v36, %v202_v34  ;;  %v162_v39 = vadd.f32 %v161_v35, %v160_v30 }
 0x16f   :  { %v183_v40 = vrot.slane %v182_v37, 2 }
 0x170   :  { %v282_v26 = vadd.f32 -0.25, %v226_v25  ;;  %v205_v41 = vrot.slane %v204_v38, 2  ;;  %v163_v42 = vrot.slane %v162_v39, 1 }
 0x171   :  { %v184_v43 = vadd.f32 %v183_v40, %v182_v37 }
 0x172   :  { %v228_v29 = vmul.f32 %v282_v26, %v282_v26  ;;  %v206_v44 = vadd.f32 %v205_v41, %v204_v38  ;;  %v164_v45 = vadd.f32 %v163_v42, %v162_v39 }
 0x173   :  { %v185_v46 = vrot.slane %v184_v43, 1 }
 0x174   :  { %v229_v32 = vsel %vm215_vm0, %v228_v29, 0.0  ;;  %287 = vpush %v164_v45  ;;  %v207_v47 = vrot.slane %v206_v44, 1 }
 0x175   :  { %230 = vadd.xlane.f32.xlu1 %v229_v32  ;;  %v186_v48 = vadd.f32 %v185_v46, %v184_v43 }
 0x176   :  { %v208_v49 = vadd.f32 %v207_v47, %v206_v44 }
 0x177   :  { %289 = vpush %v186_v48 }
 0x178   :  { %291 = vpush %v208_v49 }
 0x1a5   :  { %s288_s7 = spop %287 }
 0x1a6   :  { %s168_s19 = smul.f32 0.020833334, %s288_s7 }
 0x1a8   :  { %s290_s14 = spop %289  ;;  %v245_v61 = vstv %s168_s19 }
 0x1a9   :  { %s188_s17 = smul.f32 0.5, %s290_s14  ;;  %s292_s18 = spop %291  ;;  %v246_v63 = vsel %vm529_vm6, %v245_v61, 0.0 }
 0x1aa   :  { %s210_s20 = smul.f32 0.5, %s292_s18 }
 0x1ab   :  { %s191_s21 = smul.f32 0.5, %s188_s17 }
 0x1ac   :  { %s213_s22 = smul.f32 0.5, %s210_s20 }
 0x1ad   :  { %v249_v62 = vstv %s191_s21 }
 0x1ae   :  { %v250_v0 = vsel %vm248_vm7, %v249_v62, 0.0  ;;  %v254_v1 = vstv %s213_s22 }
 0x1af   :  { %v251_v4 = vadd.f32 %v250_v0, %v246_v63  ;;  %v255_v5 = vsel %vm253_vm11, %v254_v1, 0.0 }
 0x1b1   :  { %v256_v8 = vadd.f32 %v255_v5, %v251_v4 }
 0x202   :  { %v231_v50 = vpop.xlane.xlu1 %230 }
 0x203   :  { %v232_v51 = vrot.slane %v231_v50, 4 }
 0x205   :  { %v233_v52 = vadd.f32 %v232_v51, %v231_v50 }
 0x207   :  { %v234_v53 = vrot.slane %v233_v52, 2 }
 0x209   :  { %v235_v54 = vadd.f32 %v234_v53, %v233_v52 }
 0x20b   :  { %v236_v55 = vrot.slane %v235_v54, 1 }
 0x20d   :  { %v237_v56 = vadd.f32 %v236_v55, %v235_v54 }
 0x20f   :  { %293 = vpush %v237_v56 }
 0x240   :  { %s294_s23 = spop %293 }
 0x241   :  { %s241_s24 = smul.f32 0.125, %s294_s23 }
 0x243   :  { %v259_v9 = vstv %s241_s24 }
 0x244   :  { %v260_v10 = vsel %vm258_vm15, %v259_v9, 0.0 }
 0x245   :  { %v261_v12 = vadd.f32 %v260_v10, %v256_v8 }
 0x247   :  { %v262_v13 = vadd.f32 %v261_v12, %v136_v11 }
 0x249   :  { %263 = vst [vmem:[#allocation8] sm:$0xff] %v262_v13 }
 0x24a   :  { %388 = shalt.err (!%p385_p0)
}
 0x24b   :  { %s389_s28 = scalar_lea.hbm %s564_s10, 128 }
 0x24c   :  { %p390_p1 = scmp.ne.s32.totalorder %s564_s10, %s389_s28  ;;  %p393_p2 = scmp.lt.u32.totalorder %s389_s28, %s564_s10 }
 0x24e   :  { %p395_p3 = pnand %p393_p2, %p390_p1 }
 0x250   :  { %398 = shalt.err (!%p395_p3)
}
 0x251   :  { %273 = dma.vmem_to_hbm [thread:$0]  %s271_s26, 128, %s564_s10, [#allocation4]  }
 0x252   :  { %403 = dma.done.wait [#allocation4], 128  }
 0x253   :  { %404 = vsyncadd [#allocation4], 4294967168 }
 0x254   :  { %277 = vsyncpa [#allocation3], 1 }
 0x255   :  { %278 = vsyncpa [#allocation6], 1 }
 0x256   :  { %279 = vsyncpa [#allocation4], 1 }

</bundles_post_ra>
